<compile_context>
chip_gen: v5e
topology: v5e:2x2
jax: 0.10.0
libtpu: 0.0.40
codegen_flags: <defaults>
</compile_context>

<pallas_src>
import math

import jax
import jax.numpy as jnp
from jax.experimental import pallas as pl
from jax.experimental.pallas import tpu as pltpu


def _round_up(x, m):
    return -(-x // m) * m


def _patch_embed_kernel(p_ref, w_ref, posb_ref, o_ref):
    # p_ref:    (TM, K)   row tile of flattened patches (f32), K = C*p*p
    # w_ref:    (K, D)    projection weight, pre-transposed (f32), resident
    # posb_ref: (TM, D)   positional embedding + bias, tiled to TM rows, resident
    # o_ref:    (TM, D)   output rows (lane-dense, D multiple of 128)
    acc = jnp.dot(p_ref[...], w_ref[...], preferred_element_type=jnp.float32)
    o_ref[...] = (acc + posb_ref[...]).astype(o_ref.dtype)


def extract_patches(x, patch_size):
    """x: [B, C, H, W] -> [B, N, C*p*p] (matches torch unfold/permute/flatten)."""
    B, C, H, W = x.shape
    p = patch_size
    hp, wp = H // p, W // p
    x = x.reshape(B, C, hp, p, wp, p)
    x = jnp.transpose(x, (0, 2, 4, 1, 3, 5))          # [B, hp, wp, C, p, p]
    return x.reshape(B, hp * wp, C * p * p)


def patch_embedding(x, weight, bias, pos_embedding, patch_size,
                    *, out_dtype=None, max_tile_rows=1024):
    """
    x:             [B, C, H, W]            (NCHW, like PyTorch)
    weight:        [embed_dim, patch_dim]  (nn.Linear convention)
    bias:          [embed_dim]
    pos_embedding: [1, N, embed_dim]
    returns:       [B, N, embed_dim]
    """
    B = x.shape[0]
    out_dtype = x.dtype if out_dtype is None else out_dtype
    out_itemsize = jnp.dtype(out_dtype).itemsize

    # Patch extraction: a single XLA transpose pass over the activations.
    # TODO(synk): fuse this into the kernel to remove the extra HBM round trip.
    patches = extract_patches(x, patch_size)          # [B, N, K]
    N, K = patches.shape[1], patches.shape[2]
    D = weight.shape[0]
    M = B * N

    # ---- row-tile (TM) selection -------------------------------------------
    # TM must be a multiple of N (resident pos block repeats exactly per tile)
    # and of 8 (sublane).
    step = math.lcm(N, 8)

    # Per-tile VMEM (double-buffered LHS + output, resident W + posb), lanes
    # padded to 128. Keep comfortably under v5e's 16 MiB scoped default.
    bytes_per_row = (2 * _round_up(K, 128) * 4                 # LHS (x2 buffers)
                     + 2 * _round_up(D, 128) * 4               # posb block
                     + 2 * _round_up(D, 128) * out_itemsize)   # output (x2 buffers)
    rows_budget = max(step, ((12 << 20) // bytes_per_row) // step * step)
    max_rows = max(step, min(_round_up(max_tile_rows, step), rows_budget))

    M_min = _round_up(M, step)                  # minimal row padding
    if M_min <= max_rows:
        TM, n_tiles = M_min, 1                  # small M: one exact tile
    else:
        n_tiles = -(-M_min // max_rows)
        if n_tiles % 2:                         # even count -> both v7x TCs busy
            n_tiles += 1
        TM = _round_up(-(-M_min // n_tiles), step)
        n_tiles = -(-M_min // TM)
    M_pad = n_tiles * TM

    # ---- operand prep (no padded / cast copy of the activations) ------------
    patches_2d = patches.reshape(M, K)
    if M_pad != M:                              # rare: only when B*N % lcm(N,8) != 0
        patches_2d = jnp.pad(patches_2d, ((0, M_pad - M), (0, 0)))

    w_t = weight.T.astype(jnp.float32)          # [K, D], tiny

    # bias folded into the positional embedding; replicated to one TM-row
    # block kept resident across all grid steps via a constant index_map.
    posb = (pos_embedding.reshape(N, D) + bias[None, :]).astype(jnp.float32)
    posb_tile = jnp.tile(posb, (TM // N, 1))    # [TM, D]

    cost = pl.CostEstimate(
        flops=2 * M_pad * K * D,
        transcendentals=0,
        bytes_accessed=(M_pad * K * 4            # patches read
                        + K * D * 4              # weight (resident)
                        + TM * D * 4             # pos+bias (resident)
                        + M_pad * D * out_itemsize),
    )

    out_flat = pl.pallas_call(
        _patch_embed_kernel,
        out_shape=jax.ShapeDtypeStruct((M_pad, D), out_dtype),
        grid_spec=pltpu.PrefetchScalarGridSpec(
            num_scalar_prefetch=0,
            grid=(n_tiles,),
            in_specs=[
                pl.BlockSpec((TM, K), lambda i: (i, 0)),   # K == full last dim
                pl.BlockSpec((K, D), lambda i: (0, 0)),    # resident weight
                pl.BlockSpec((TM, D), lambda i: (0, 0)),   # resident pos+bias
            ],
            out_specs=pl.BlockSpec((TM, D), lambda i: (i, 0)),
        ),
        compiler_params=pltpu.CompilerParams(
            dimension_semantics=("parallel",),
        ),
        cost_estimate=cost,
    )(patches_2d, w_t, posb_tile)

    return out_flat[:M].reshape(B, N, D)


if __name__ == "__main__":
    # Module defaults: patch_size=7, embed_dim=128, img_channels=1, img_size=28
    patch_size = 7
    embed_dim = 128
    img_channels = 1
    img_size = 28
    batch = 4

    num_patches = (img_size // patch_size) ** 2            # 16
    patch_dim = patch_size * patch_size * img_channels     # 49

    key = jax.random.PRNGKey(0)
    kx, kw, kb, kp = jax.random.split(key, 4)

    x = jax.random.normal(kx, (batch, img_channels, img_size, img_size),
                          dtype=jnp.float32)
    weight = jax.random.normal(kw, (embed_dim, patch_dim), dtype=jnp.float32) * 0.02
    bias = jax.random.normal(kb, (embed_dim,), dtype=jnp.float32) * 0.02
    # __init__ uses zeros; small random values exercise the add path.
    pos_embedding = jax.random.normal(kp, (1, num_patches, embed_dim),
                                      dtype=jnp.float32) * 0.02

    out = patch_embedding(x, weight, bias, pos_embedding, patch_size)
    out = jax.block_until_ready(out)

    # Pure-JAX f32 reference.
    patches_ref = extract_patches(x, patch_size)
    ref = jnp.einsum("bnp,dp->bnd", patches_ref, weight,
                     preferred_element_type=jnp.float32)
    ref = (ref + bias[None, None, :] + pos_embedding).astype(x.dtype)

    assert out.shape == (batch, num_patches, embed_dim)
    assert jnp.allclose(out, ref, atol=2e-3, rtol=2e-3), "mismatch vs reference"

    print("KERNEL_OK")
</pallas_src>

<mosaic_0001>
module attributes {stable_mosaic.version = 11 : i64} {
  func.func @_patch_embed_kernel(%arg0: i32, %arg1: memref<64x49xf32, #tpu.memory_space<vmem>>, %arg2: memref<49x128xf32, #tpu.memory_space<vmem>>, %arg3: memref<64x128xf32, #tpu.memory_space<vmem>>, %arg4: memref<64x128xf32, #tpu.memory_space<vmem>>) attributes {dimension_semantics = [#tpu.dimension_semantics<parallel>], iteration_bounds = array<i64: 1>, scalar_prefetch = 0 : i64, scratch_operands = 0 : i64, tpu.core_type = #tpu.core_type<tc>, window_params = [{transform_indices = @transform_0, window_bounds = array<i64: 64, 49>}, {pipeline_mode = #tpu.pipeline_mode<synchronous>, transform_indices = @transform_1, window_bounds = array<i64: 49, 128>}, {pipeline_mode = #tpu.pipeline_mode<synchronous>, transform_indices = @transform_2, window_bounds = array<i64: 64, 128>}, {transform_indices = @transform_3, window_bounds = array<i64: 64, 128>}]} {
    %c0 = arith.constant 0 : index
    %c0_0 = arith.constant 0 : index
    %0 = vector.load %arg1[%c0, %c0_0] : memref<64x49xf32, #tpu.memory_space<vmem>>, vector<64x49xf32>
    %c0_1 = arith.constant 0 : index
    %c0_2 = arith.constant 0 : index
    %1 = vector.load %arg2[%c0_1, %c0_2] : memref<49x128xf32, #tpu.memory_space<vmem>>, vector<49x128xf32>
    %cst = arith.constant dense<0.000000e+00> : vector<64x128xf32>
    %2 = tpu.matmul %0, %1, %cst {dimension_numbers = #tpu.dot_dimension_numbers<[1], [0], [0], [1], [0, 0, 1, 1], [], []>} : vector<64x49xf32>, vector<49x128xf32>, vector<64x128xf32> -> vector<64x128xf32>
    %c0_3 = arith.constant 0 : index
    %c0_4 = arith.constant 0 : index
    %3 = vector.load %arg3[%c0_3, %c0_4] : memref<64x128xf32, #tpu.memory_space<vmem>>, vector<64x128xf32>
    %4 = arith.addf %2, %3 : vector<64x128xf32>
    %c0_5 = arith.constant 0 : index
    %c0_6 = arith.constant 0 : index
    %5 = vector.load %arg4[%c0_5, %c0_6] : memref<64x128xf32, #tpu.memory_space<vmem>>, vector<64x128xf32>
    tpu.vector_store %arg4[%c0_5, %c0_6], %4 {strides = array<i32>} : memref<64x128xf32, #tpu.memory_space<vmem>>, vector<64x128xf32>,
    return
  }
  func.func @transform_0(%arg0: i32) -> (i32, i32) {
    %c0_i32 = arith.constant 0 : i32
    %c0_i32_0 = arith.constant 0 : i32
    return %arg0, %c0_i32 : i32, i32
  }
  func.func @transform_1(%arg0: i32) -> (i32, i32) {
    %c0_i32 = arith.constant 0 : i32
    %c0_i32_0 = arith.constant 0 : i32
    %c0_i32_1 = arith.constant 0 : i32
    return %c0_i32, %c0_i32_0 : i32, i32
  }
  func.func @transform_2(%arg0: i32) -> (i32, i32) {
    %c0_i32 = arith.constant 0 : i32
    %c0_i32_0 = arith.constant 0 : i32
    %c0_i32_1 = arith.constant 0 : i32
    return %c0_i32, %c0_i32_0 : i32, i32
  }
  func.func @transform_3(%arg0: i32) -> (i32, i32) {
    %c0_i32 = arith.constant 0 : i32
    %c0_i32_0 = arith.constant 0 : i32
    return %arg0, %c0_i32 : i32, i32
  }
}

</mosaic_0001>

<bundles_post_ra>
// kernel: tpu_custom_call.1
= control target key start
LH: loop header
LB: loop body
LE: loop exit
PB: predicated region body
PF: predicated region fallthrough
CT: control target
= control target key end

     0   :  { %vm63_vm0 = vcmask 1040384   ;;  %s296_s0 = inlined_call_operand.vmem [shape: f32[64,49], index: 0, kind: input, shape index: {}]   ;;  %s297_s1 = inlined_call_operand.vmem [shape: f32[49,128], index: 1, kind: input, shape index: {}]   ;;  %s298_s2 = inlined_call_operand.vmem [shape: f32[64,128], index: 2, kind: input, shape index: {}]   ;;  %s299_s3 = inlined_call_operand.hbm [shape: f32[64,128], index: 3, kind: output, shape index: {}]  }
   0x1   :  { %v29_v0 = vld [vmem:[%s297_s1 + $0x30] sm:$0x1]  ;;  %v28_v1 = vld [vmem:[%s297_s1 + $0x28] sm:$0xff]  ;;  %v27_v2 = vld [vmem:[%s297_s1 + $0x20] sm:$0xff] }
   0x2   :  { %144 = vmatpush.msk.msra.mxu2 %vm63_vm0, %v29_v0  ;;  %145 = vmatpush.msk.msra.mxu3 %vm63_vm0, %v29_v0  ;;  %v26_v3 = vld [vmem:[%s297_s1 + $0x18] sm:$0xff] }
   0x3   :  { %134 = vmatpush.msk.msra.mxu0 %vm63_vm0, %v29_v0  ;;  %143 = vmatpush.msk.msra.mxu1 %vm63_vm0, %v29_v0 }
   0x4   :  { %147 = vmatpush.msra.mxu2 %v28_v1  ;;  %148 = vmatpush.msra.mxu3 %v28_v1 }
   0x5   :  { %77 = vmatpush.msra.mxu0 %v28_v1  ;;  %146 = vmatpush.msra.mxu1 %v28_v1 }
   0x6   :  { %150 = vmatpush.msra.mxu2 %v27_v2  ;;  %151 = vmatpush.msra.mxu3 %v27_v2 }
   0x7   :  { %8 = vsyncpa [#allocation3], 0  ;;  %v25_v4 = vld [vmem:[%s297_s1 + $0x10] sm:$0xff]  ;;  %78 = vmatpush.msra.mxu0 %v27_v2  ;;  %149 = vmatpush.msra.mxu1 %v27_v2  ;;  %v24_v5 = vld [vmem:[%s297_s1 + $0x8] sm:$0xff]  ;;  %vm38_vm1 = vcmask 400384   ;;  %s193_s29 = smov [#allocation2]  }
   0x8   :  { %153 = vmatpush.msra.mxu2 %v26_v3  ;;  %154 = vmatpush.msra.mxu3 %v26_v3  ;;  %v23_v6 = vld [vmem:[%s297_s1] sm:$0xff]  ;;  %v21_v8 = vld [vmem:[%s296_s0 + $0x30] sm:$0xff]  ;;  %v20_v11 = vld [vmem:[%s296_s0 + $0x28] sm:$0xff]  ;;  %s120_s30 = sshll.u32 %s193_s29, 4  ;;  %s122_s5 = sshll.u32 %s299_s3, 4  ;;  %s121_s30 = int_to_ptr.vmem [resolvable:$true] %s120_s30  ;;  %s123_s5 = int_to_ptr.hbm [resolvable:$true] %s122_s5 }
   0x9   :  { %79 = vmatpush.msra.mxu0 %v26_v3  ;;  %152 = vmatpush.msra.mxu1 %v26_v3  ;;  %v19_v7 = vld [vmem:[%s296_s0 + $0x20] sm:$0xff]  ;;  %v17_v10 = vld [vmem:[%s296_s0 + $0x10] sm:$0xff]  ;;  %v22_v12 = vld [vmem:[%s296_s0 + $0x38] sm:$0xff]  ;;  %s194_s6 = smov 128   ;;  %s195_s7 = smov 8  }
   0xa   :  { %156 = vmatpush.msra.mxu2 %v25_v4  ;;  %157 = vmatpush.msra.mxu3 %v25_v4  ;;  %v15_v9 = vld [vmem:[%s296_s0] sm:$0xff]  ;;  %v16_v13 = vld [vmem:[%s296_s0 + $0x8] sm:$0xff]  ;;  %v18_v14 = vld [vmem:[%s296_s0 + $0x18] sm:$0xff] }
   0xb   :  { %80 = vmatpush.msra.mxu0 %v25_v4  ;;  %155 = vmatpush.msra.mxu1 %v25_v4  ;;  %v30_v15 = vld [vmem:[%s298_s2] sm:$0xff]  ;;  %v32_v16 = vld [vmem:[%s298_s2 + $0x10] sm:$0xff]  ;;  %v31_v27 = vld [vmem:[%s298_s2 + $0x8] sm:$0xff] }
   0xc   :  { %159 = vmatpush.msra.mxu2 %v24_v5  ;;  %160 = vmatpush.msra.mxu3 %v24_v5  ;;  %v34_v21 = vld [vmem:[%s298_s2 + $0x20] sm:$0xff]  ;;  %v36_v22 = vld [vmem:[%s298_s2 + $0x30] sm:$0xff]  ;;  %v33_v28 = vld [vmem:[%s298_s2 + $0x18] sm:$0xff] }
   0xd   :  { %81 = vmatpush.msra.mxu0 %v24_v5  ;;  %158 = vmatpush.msra.mxu1 %v24_v5  ;;  %v35_v33 = vld [vmem:[%s298_s2 + $0x28] sm:$0xff]  ;;  %v37_v34 = vld [vmem:[%s298_s2 + $0x38] sm:$0xff] }
   0xe   :  { %162 = vmatpush.msra.mxu2 %v23_v6  ;;  %163 = vmatpush.msra.mxu3 %v23_v6 }
   0xf   :  { %139 = vmatmul.msk.f32.vlgmr.msra.gmra.mxu2 %vm38_vm1, %v19_v7  ;;  %141 = vmatmul.msk.f32.vlgmr.msra.gmra.mxu3 %vm38_vm1, %v21_v8 }
  0x10   :  { %82 = vmatpush.msra.mxu0 %v23_v6  ;;  %161 = vmatpush.msra.mxu1 %v23_v6 }
  0x11   :  { %135 = vmatmul.msk.f32.vlgmr.msra.gmra.mxu0 %vm38_vm1, %v15_v9  ;;  %137 = vmatmul.msk.f32.vlgmr.msra.gmra.mxu1 %vm38_vm1, %v17_v10 }
  0x17   :  { %140 = vmatmul.msk.f32.gmra.mxu2 %vm38_vm1, %v20_v11  ;;  %142 = vmatmul.msk.f32.gmra.mxu3 %vm38_vm1, %v22_v12 }
  0x19   :  { %136 = vmatmul.msk.f32.gmra.mxu0 %vm38_vm1, %v16_v13  ;;  %138 = vmatmul.msk.f32.gmra.mxu1 %vm38_vm1, %v18_v14 }
  0x8e   :  { %v84_v17 = vpop.f32.mrf.mxu0  ;;  %v90_v18 = vpop.f32.mrf.mxu1 }
  0x8f   :  { %v85_v19 = vadd.f32 %v84_v17, %v30_v15  ;;  %v91_v20 = vadd.f32 %v90_v18, %v32_v16 }
  0x91   :  { %108 = vst [vmem:[#allocation2] sm:$0xff] %v85_v19 }
  0x92   :  { %110 = vst [vmem:[#allocation2 + $0x10] sm:$0xff] %v91_v20  ;;  %v96_v23 = vpop.f32.mrf.mxu2  ;;  %v102_v24 = vpop.f32.mrf.mxu3 }
  0x93   :  { %v97_v25 = vadd.f32 %v96_v23, %v34_v21  ;;  %v103_v26 = vadd.f32 %v102_v24, %v36_v22 }
  0x95   :  { %112 = vst [vmem:[#allocation2 + $0x20] sm:$0xff] %v97_v25 }
  0x96   :  { %114 = vst [vmem:[#allocation2 + $0x30] sm:$0xff] %v103_v26  ;;  %v87_v29 = vpop.f32.mrf.mxu0  ;;  %v93_v30 = vpop.f32.mrf.mxu1 }
  0x97   :  { %v88_v31 = vadd.f32 %v87_v29, %v31_v27  ;;  %v94_v32 = vadd.f32 %v93_v30, %v33_v28 }
  0x99   :  { %109 = vst [vmem:[#allocation2 + $0x8] sm:$0xff] %v88_v31 }
  0x9a   :  { %111 = vst [vmem:[#allocation2 + $0x18] sm:$0xff] %v94_v32  ;;  %v99_v35 = vpop.f32.mrf.mxu2  ;;  %v105_v36 = vpop.f32.mrf.mxu3 }
  0x9b   :  { %v100_v37 = vadd.f32 %v99_v35, %v35_v33  ;;  %v106_v38 = vadd.f32 %v105_v36, %v37_v34 }
  0x9d   :  { %113 = vst [vmem:[#allocation2 + $0x28] sm:$0xff] %v100_v37 }
  0x9e   :  { %115 = vst [vmem:[#allocation2 + $0x38] sm:$0xff] %v106_v38 }
  0x9f   :  { %128 = dma.vmem_to_hbm [thread:$0]  %s121_s30, 1024, %s123_s5, [#allocation3], %s194_s6, %s194_s6, %s195_s7  }
  0xa0   :  { %191 = dma.done.wait [#allocation3], 1024  }
  0xa1   :  { %192 = vsyncadd [#allocation3], 4294966272 }
  0xa2   :  { %133 = vsyncpa [#allocation3], 1 }

</bundles_post_ra>
